<compile_context>
chip_gen: v6e
topology: v6e:2x2x1
jax: 0.10.0
libtpu: 0.0.40
codegen_flags: <defaults>
</compile_context>

<pallas_src>
import functools

import jax
import jax.numpy as jnp
from jax.experimental import pallas as pl
from jax.experimental.pallas import tpu as pltpu


# Below this many bytes the fixed pallas_call dispatch overhead dwarfs the
# copy, so the plain XLA formulation is strictly better.
_SMALL_INPUT_BYTES = 1 << 20  # 1 MiB


def _sublane_multiple(dtype) -> int:
    """Second-minor (sublane) tiling multiple for an HBM/VMEM-tiled dtype.

    f32 -> 8, bf16 -> 16, int8/fp8 -> 32.  Sequence-chunk offsets that are
    multiples of this keep the HBM DMA slices tile-aligned.
    """
    itemsize = jnp.dtype(dtype).itemsize
    return max(1, 4 // itemsize) * 8


def _chunk_ref(x, n_sections):
    """Pure-JAX reference: torch.cat(torch.chunk(x, n_sections, dim=-2), dim=0)."""
    return jnp.concatenate(jnp.split(x, n_sections, axis=-2), axis=0)


def _chunk_dma_kernel(x_hbm, o_hbm, sems, *, n_sections, B, Lc):
    # Pure data movement: one strided HBM->HBM DMA per section.  All DMAs are
    # issued back-to-back so the DMA engines overlap them, then waited.
    # n_sections / B / Lc are trace-time Python ints, so the loops unroll.
    for c in range(n_sections):
        pltpu.make_async_copy(
            x_hbm.at[:, pl.ds(c * Lc, Lc), :],   # (B, Lc, D) slab of the input
            o_hbm.at[pl.ds(c * B, B)],           # output rows c*B : (c+1)*B
            sems.at[c],
        ).start()
    for c in range(n_sections):
        pltpu.make_async_copy(
            x_hbm.at[:, pl.ds(c * Lc, Lc), :],
            o_hbm.at[pl.ds(c * B, B)],
            sems.at[c],
        ).wait()


def chunk(x, n_sections=2, *, force_pallas=False):
    """Pallas equivalent of torch.cat(torch.chunk(x, n_sections, dim=-2), dim=0)."""
    assert x.ndim == 3, "Chunk expects a (batch, seq, feature) input"
    B, L, D = x.shape
    assert L % n_sections == 0, "sequence length must be divisible by n_sections"
    Lc = L // n_sections
    itemsize = jnp.dtype(x.dtype).itemsize

    # Tiny-input fast path: XLA's fused copy beats kernel dispatch overhead.
    if not force_pallas and x.size * itemsize < _SMALL_INPUT_BYTES:
        return _chunk_ref(x, n_sections)

    # The DMA path slices the sequence axis at offsets c*Lc; keep those
    # offsets aligned to the dtype's sublane tiling so every HBM DMA stays
    # tile-aligned.  Odd chunk lengths take the XLA copy instead.
    # TODO(synk): handle unaligned Lc in-kernel via a (B, n_sections, Lc*D)
    # lane-collapsed layout instead of falling back to XLA.
    if Lc % _sublane_multiple(x.dtype) != 0:
        return _chunk_ref(x, n_sections)

    kernel = functools.partial(_chunk_dma_kernel, n_sections=n_sections, B=B, Lc=Lc)

    return pl.pallas_call(
        kernel,
        out_shape=jax.ShapeDtypeStruct((n_sections * B, Lc, D), x.dtype),
        in_specs=[pl.BlockSpec(memory_space=pl.ANY)],   # raw HBM ref, no auto-DMA
        out_specs=pl.BlockSpec(memory_space=pl.ANY),    # write straight to HBM
        scratch_shapes=[pltpu.SemaphoreType.DMA((n_sections,))],
        compiler_params=pltpu.CompilerParams(has_side_effects=True),
    )(x)


if __name__ == "__main__":
    key = jax.random.PRNGKey(0)

    # Small demo shape consistent with the module: batch=2, seq=16, hidden=128.
    # Lc = 16 // 2 = 8 keeps the DMA slices sublane-aligned for f32.
    B, L, D = 2, 16, 128
    n_sections = 2
    x = jax.random.normal(key, (B, L, D), dtype=jnp.float32)

    # force_pallas=True so the small demo exercises the Pallas kernel rather
    # than the tiny-input XLA fast path.
    out = chunk(x, n_sections=n_sections, force_pallas=True)
    out = jax.block_until_ready(out)

    ref = _chunk_ref(x, n_sections)
    assert out.shape == (n_sections * B, L // n_sections, D), out.shape
    assert out.dtype == x.dtype
    assert jnp.array_equal(out, ref), "Pallas Chunk output mismatch vs reference"

    # Second case: bf16, 4 sections (Lc = 16 = bf16 sublane multiple).
    key2, key3 = jax.random.split(key)
    x2 = jax.random.normal(key2, (4, 64, 256), dtype=jnp.bfloat16)
    out2 = jax.block_until_ready(chunk(x2, n_sections=4, force_pallas=True))
    assert jnp.array_equal(out2, _chunk_ref(x2, 4)), "bf16 Chunk mismatch"

    # Unaligned chunk length (Lc = 6) and tiny inputs take the XLA fallback.
    x3 = jax.random.normal(key3, (2, 12, 64), dtype=jnp.float32)
    out3 = jax.block_until_ready(chunk(x3, n_sections=2))
    assert jnp.array_equal(out3, _chunk_ref(x3, 2)), "fallback Chunk mismatch"

    print("KERNEL_OK")
</pallas_src>

<mosaic_0001>
module attributes {stable_mosaic.version = 11 : i64} {
  func.func @_chunk_dma_kernel(%arg0: memref<2x16x128xf32, #tpu.memory_space<any>>, %arg1: memref<4x8x128xf32, #tpu.memory_space<any>>, %arg2: memref<2x!tpu.dma_semaphore, #tpu.memory_space<semaphore_mem>>) attributes {dimension_semantics = [], scalar_prefetch = 0 : i64, scratch_operands = 1 : i64, tpu.core_type = #tpu.core_type<tc>} {
    %c0_i32 = arith.constant 0 : i32
    %c0_i32_0 = arith.constant 0 : i32
    %c0_i32_1 = arith.constant 0 : i32
    %c0_i32_2 = arith.constant 0 : i32
    %0 = tpu.memref_slice %arg0[%c0_i32_0, %c0_i32_1, %c0_i32_2] : memref<2x16x128xf32, #tpu.memory_space<any>> -> memref<2x8x128xf32, #tpu.memory_space<any>>
    %c0_i32_3 = arith.constant 0 : i32
    %c0_i32_4 = arith.constant 0 : i32
    %c0_i32_5 = arith.constant 0 : i32
    %1 = tpu.memref_slice %arg1[%c0_i32_3, %c0_i32_4, %c0_i32_5] : memref<4x8x128xf32, #tpu.memory_space<any>> -> memref<2x8x128xf32, #tpu.memory_space<any>>
    %2 = tpu.memref_slice %arg2[%c0_i32] : memref<2x!tpu.dma_semaphore, #tpu.memory_space<semaphore_mem>> -> memref<1x!tpu.dma_semaphore, #tpu.memory_space<semaphore_mem>>
    %3 = tpu.memref_squeeze %2 : memref<1x!tpu.dma_semaphore, #tpu.memory_space<semaphore_mem>> -> memref<!tpu.dma_semaphore, #tpu.memory_space<semaphore_mem>>
    tpu.enqueue_dma source(%0 : memref<2x8x128xf32, #tpu.memory_space<any>>) target(%1 : memref<2x8x128xf32, #tpu.memory_space<any>>) target_semaphore(%3 : memref<!tpu.dma_semaphore, #tpu.memory_space<semaphore_mem>>)
    %c1_i32 = arith.constant 1 : i32
    %c0_i32_6 = arith.constant 0 : i32
    %c8_i32 = arith.constant 8 : i32
    %c0_i32_7 = arith.constant 0 : i32
    %4 = tpu.memref_slice %arg0[%c0_i32_6, %c8_i32, %c0_i32_7] : memref<2x16x128xf32, #tpu.memory_space<any>> -> memref<2x8x128xf32, #tpu.memory_space<any>>
    %c2_i32 = arith.constant 2 : i32
    %c0_i32_8 = arith.constant 0 : i32
    %c0_i32_9 = arith.constant 0 : i32
    %5 = tpu.memref_slice %arg1[%c2_i32, %c0_i32_8, %c0_i32_9] : memref<4x8x128xf32, #tpu.memory_space<any>> -> memref<2x8x128xf32, #tpu.memory_space<any>>
    %6 = tpu.memref_slice %arg2[%c1_i32] : memref<2x!tpu.dma_semaphore, #tpu.memory_space<semaphore_mem>> -> memref<1x!tpu.dma_semaphore, #tpu.memory_space<semaphore_mem>>
    %7 = tpu.memref_squeeze %6 : memref<1x!tpu.dma_semaphore, #tpu.memory_space<semaphore_mem>> -> memref<!tpu.dma_semaphore, #tpu.memory_space<semaphore_mem>>
    tpu.enqueue_dma source(%4 : memref<2x8x128xf32, #tpu.memory_space<any>>) target(%5 : memref<2x8x128xf32, #tpu.memory_space<any>>) target_semaphore(%7 : memref<!tpu.dma_semaphore, #tpu.memory_space<semaphore_mem>>)
    %c0_i32_10 = arith.constant 0 : i32
    %c0_i32_11 = arith.constant 0 : i32
    %c0_i32_12 = arith.constant 0 : i32
    %c0_i32_13 = arith.constant 0 : i32
    %8 = tpu.memref_slice %arg0[%c0_i32_11, %c0_i32_12, %c0_i32_13] : memref<2x16x128xf32, #tpu.memory_space<any>> -> memref<2x8x128xf32, #tpu.memory_space<any>>
    %c0_i32_14 = arith.constant 0 : i32
    %c0_i32_15 = arith.constant 0 : i32
    %c0_i32_16 = arith.constant 0 : i32
    %9 = tpu.memref_slice %arg1[%c0_i32_14, %c0_i32_15, %c0_i32_16] : memref<4x8x128xf32, #tpu.memory_space<any>> -> memref<2x8x128xf32, #tpu.memory_space<any>>
    %10 = tpu.memref_slice %arg2[%c0_i32_10] : memref<2x!tpu.dma_semaphore, #tpu.memory_space<semaphore_mem>> -> memref<1x!tpu.dma_semaphore, #tpu.memory_space<semaphore_mem>>
    %11 = tpu.memref_squeeze %10 : memref<1x!tpu.dma_semaphore, #tpu.memory_space<semaphore_mem>> -> memref<!tpu.dma_semaphore, #tpu.memory_space<semaphore_mem>>
    tpu.wait_dma2 semaphore(%11 : memref<!tpu.dma_semaphore, #tpu.memory_space<semaphore_mem>>) src(%8 : memref<2x8x128xf32, #tpu.memory_space<any>>) dst(%9 : memref<2x8x128xf32, #tpu.memory_space<any>>)
    %c1_i32_17 = arith.constant 1 : i32
    %c0_i32_18 = arith.constant 0 : i32
    %c8_i32_19 = arith.constant 8 : i32
    %c0_i32_20 = arith.constant 0 : i32
    %12 = tpu.memref_slice %arg0[%c0_i32_18, %c8_i32_19, %c0_i32_20] : memref<2x16x128xf32, #tpu.memory_space<any>> -> memref<2x8x128xf32, #tpu.memory_space<any>>
    %c2_i32_21 = arith.constant 2 : i32
    %c0_i32_22 = arith.constant 0 : i32
    %c0_i32_23 = arith.constant 0 : i32
    %13 = tpu.memref_slice %arg1[%c2_i32_21, %c0_i32_22, %c0_i32_23] : memref<4x8x128xf32, #tpu.memory_space<any>> -> memref<2x8x128xf32, #tpu.memory_space<any>>
    %14 = tpu.memref_slice %arg2[%c1_i32_17] : memref<2x!tpu.dma_semaphore, #tpu.memory_space<semaphore_mem>> -> memref<1x!tpu.dma_semaphore, #tpu.memory_space<semaphore_mem>>
    %15 = tpu.memref_squeeze %14 : memref<1x!tpu.dma_semaphore, #tpu.memory_space<semaphore_mem>> -> memref<!tpu.dma_semaphore, #tpu.memory_space<semaphore_mem>>
    tpu.wait_dma2 semaphore(%15 : memref<!tpu.dma_semaphore, #tpu.memory_space<semaphore_mem>>) src(%12 : memref<2x8x128xf32, #tpu.memory_space<any>>) dst(%13 : memref<2x8x128xf32, #tpu.memory_space<any>>)
    return
  }
}

</mosaic_0001>

<bundles_post_ra>
// kernel: tpu_custom_call.1
= control target key start
LH: loop header
LB: loop body
LE: loop exit
PB: predicated region body
PF: predicated region fallthrough
CT: control target
= control target key end

     0   :  { %s67_s6 = smov 256   ;;  %s68_s7 = smov 128   ;;  %s96_s0 = inlined_call_operand.hbm [shape: f32[2,16,128], index: 0, kind: input, shape index: {}]   ;;  %s97_s1 = inlined_call_operand.hbm [shape: f32[4,8,128], index: 1, kind: output, shape index: {}]  }
   0x1   :  { %12 = sst [smem:[#allocation4]] %s67_s6  ;;  %s69_s8 = smov 8  }
   0x2   :  { %14 = sst [smem:[#allocation4 + $0x1]] %s68_s7  ;;  %s19_s11 = scalar_lea.hbm %s96_s0, 128 }
   0x3   :  { %16 = sst [smem:[#allocation4 + $0x2]] %s69_s8  ;;  %s70_s12 = smov [#allocation2]  }
   0x4   :  { %s71_s13 = smov 131072   ;;  %s72_s14 = smov 0  }
   0x5   :  { %18 = dma.general %s96_s0, 256, %s97_s1, %s70_s12, %s71_s13, [#allocation4], %s72_s14, 0  }
   0x6   :  { %28 = sst [smem:[#allocation6]] %s67_s6  ;;  %s20_s21 = scalar_lea.hbm %s97_s1, 256 }
   0x7   :  { %30 = sst [smem:[#allocation6 + $0x1]] %s68_s7  ;;  %s73_s22 = smov [#allocation2 + $0x1]  }
   0x8   :  { %32 = sst [smem:[#allocation6 + $0x2]] %s69_s8 }
   0x9   :  { %34 = dma.general %s19_s11, 256, %s20_s21, %s73_s22, %s71_s13, [#allocation6], %s72_s14, 0  }
   0xa   :  { %63 = dma.done.wait [#allocation2], 256 }
   0xb   :  { %64 = vsyncadd [#allocation2], 4294967040 }
   0xc   :  { %65 = dma.done.wait [#allocation2 + $0x1], 256 }
   0xd   :  { %66 = vsyncadd [#allocation2 + $0x1], 4294967040 }
   0xe   :  { %41 = vsyncmov [#allocation2] }
  0x11   :  { %s42_s23 = vpop.sfrf %41 }
  0x12   :  { %p54_p0 = scmp.ne.s32.totalorder %s42_s23, 0 }
  0x14   :  { %46 = shalt.err (%p54_p0)  }
  0x15   :  { %48 = vsyncmov [#allocation2 + $0x1] }
  0x18   :  { %s49_s24 = vpop.sfrf %48 }
  0x19   :  { %p55_p1 = scmp.ne.s32.totalorder %s49_s24, 0 }
  0x1b   :  { %53 = shalt.err (%p55_p1)  }

</bundles_post_ra>
